<compile_context>
chip_gen: v7x
topology: tpu7x:2x2x1
jax: 0.10.0
libtpu: 0.0.40
codegen_flags: <defaults>
</compile_context>

<pallas_src>
import functools

import jax
import jax.numpy as jnp
from jax.experimental import pallas as pl
from jax.experimental.pallas import tpu as pltpu

_NEG_BIG = -1e30  # acts as -inf for padded classes without inf-inf NaN risk


def _round_up(v, m):
    return (v + m - 1) // m * m


def _constraint_kernel(x_ref, w_ref, b_ref, y_ref, out_ref, *, use_softmax):
    # x: (TB, D) bf16 | w: (D, Cp) bf16 | b: (1, Cp) f32 (padded lanes ~ -1e30)
    # y: (1, TB) int32 | out: (1, TB) f32
    logits = jnp.dot(x_ref[...], w_ref[...],
                     preferred_element_type=jnp.float32)     # MXU, f32 acc
    logits = logits + b_ref[...]                             # (TB, Cp) f32

    # Transpose once so the class axis is in sublanes and every reduction
    # produces a lane-dense (1, TB) row that can be stored unmasked.
    lt = jnp.transpose(logits)                               # (Cp, TB)

    y = y_ref[...]                                           # (1, TB) int32
    cls = jax.lax.broadcasted_iota(jnp.int32, lt.shape, 0)   # class id / sublane
    is_y = cls == y                                          # (Cp, TB)

    # logit at the reference class / max logit over the other classes.
    logit_y = jnp.sum(jnp.where(is_y, lt, 0.0), axis=0, keepdims=True)     # (1, TB)
    logit_o = jnp.max(jnp.where(is_y, _NEG_BIG, lt), axis=0, keepdims=True)

    if use_softmax:
        m = jnp.max(lt, axis=0, keepdims=True)                             # (1, TB)
        denom = jnp.sum(jnp.exp(lt - m), axis=0, keepdims=True)            # (1, TB)
        inv = pl.reciprocal(denom, approx=True)                            # EUP vrcp
        # p_y - max_{i!=y} p_i  (exp is monotone, shared denominator)
        out_ref[...] = (jnp.exp(logit_y - m) - jnp.exp(logit_o - m)) * inv
    else:
        out_ref[...] = logit_y - logit_o


@functools.partial(jax.jit, static_argnames=("use_softmax", "tb"))
def constraint_misclassify_forward(x, w, b, y, use_softmax=True, tb=None):
    """g(x) = -Margin(softmax(x @ W + b), y).  Returns shape (B,) float32."""
    B, D = x.shape
    C = w.shape[1]
    Cp = _round_up(C, 128)

    if tb is None:
        # Keep double-buffered bf16 x tiles within ~8 MiB (safe for v7x's
        # 32 MiB scoped / 64 MiB physical VMEM); cap at 512 rows.
        cap = max(128, ((8 * 1024 * 1024) // (4 * D)) // 128 * 128)
        tb = min(512, cap, _round_up(B, 128))
    B_pad = _round_up(B, tb)

    # Pad + cast inputs. bf16 for the MXU operands; bias stays f32 and carries
    # the -inf-like mask for the padded class lanes.
    xb = jnp.pad(x.astype(jnp.bfloat16), ((0, B_pad - B), (0, 0)))
    wb = jnp.pad(w.astype(jnp.bfloat16), ((0, 0), (0, Cp - C)))
    bb = jnp.pad(b.reshape(1, C).astype(jnp.float32), ((0, 0), (0, Cp - C)),
                 constant_values=_NEG_BIG)
    yb = jnp.pad(y.reshape(1, B).astype(jnp.int32), ((0, 0), (0, B_pad - B)))

    kernel = functools.partial(_constraint_kernel, use_softmax=use_softmax)

    out = pl.pallas_call(
        kernel,
        out_shape=jax.ShapeDtypeStruct((1, B_pad), jnp.float32),
        grid=(B_pad // tb,),
        in_specs=[
            pl.BlockSpec((tb, D), lambda i: (i, 0)),    # x: streamed per tile
            pl.BlockSpec((D, Cp), lambda i: (0, 0)),    # W: VMEM-resident
            pl.BlockSpec((1, Cp), lambda i: (0, 0)),    # b: VMEM-resident
            pl.BlockSpec((1, tb), lambda i: (0, i)),    # y: lane-dense
        ],
        out_specs=pl.BlockSpec((1, tb), lambda i: (0, i)),  # lane-dense output
        compiler_params=pltpu.CompilerParams(
            dimension_semantics=("parallel",),
            vmem_limit_bytes=32 * 1024 * 1024,
        ),
    )(xb, wb, bb, yb)
    return out[0, :B]


class ConstraintMisclassifyPallas:
    """JAX/Pallas port of ConstraintMisclassify with a linear `model`."""

    def __init__(self, x0, w, b, softmax=True):
        self.w = w
        self.b = b
        self.softmax = softmax
        # y = model(x0).argmax(1)  -- setup glue, plain JAX
        logits0 = x0.astype(jnp.float32) @ w.astype(jnp.float32) + b
        self.y = jnp.argmax(logits0, axis=1).astype(jnp.int32)

    def __call__(self, x, subset=None, tb=None):
        y = self.y if subset is None else self.y[subset]
        if x.shape[0] != y.shape[0]:
            raise ValueError("x and subset of x0 have different batch size.")
        return constraint_misclassify_forward(x, self.w, self.b, y,
                                              use_softmax=self.softmax, tb=tb)


def _reference(x, w, b, y, use_softmax=True):
    # Matches the kernel's bf16 operand rounding; math in f32.
    xf = x.astype(jnp.bfloat16).astype(jnp.float32)
    wf = w.astype(jnp.bfloat16).astype(jnp.float32)
    logits = xf @ wf + b
    pred = jax.nn.softmax(logits, axis=1) if use_softmax else logits
    C = logits.shape[1]
    onehot = jax.nn.one_hot(y, C, dtype=jnp.bool_)
    p_y = jnp.sum(jnp.where(onehot, pred, 0.0), axis=1)
    p_other = jnp.max(jnp.where(onehot, -jnp.inf, pred), axis=1)
    return p_y - p_other


if __name__ == "__main__":
    key = jax.random.PRNGKey(0)

    # --- small case (shapes implied by the module) ---
    B, D, C = 8, 32, 16
    k0, k1, k2, k3 = jax.random.split(key, 4)
    x0 = jax.random.normal(k0, (B, D), dtype=jnp.float32)
    x = jax.random.normal(k1, (B, D), dtype=jnp.float32)
    w = jax.random.normal(k2, (D, C), dtype=jnp.float32) * 0.1
    b = jax.random.normal(k3, (C,), dtype=jnp.float32) * 0.01

    constraint = ConstraintMisclassifyPallas(x0, w, b, softmax=True)
    g = jax.block_until_ready(constraint(x))
    g_ref = _reference(x, w, b, constraint.y, use_softmax=True)
    assert g.shape == (B,)
    assert jnp.allclose(g, g_ref, atol=5e-3, rtol=5e-3), (g, g_ref)

    # softmax=False branch (margin on raw logits)
    constraint_nosm = ConstraintMisclassifyPallas(x0, w, b, softmax=False)
    g2 = jax.block_until_ready(constraint_nosm(x))
    g2_ref = _reference(x, w, b, constraint_nosm.y, use_softmax=False)
    assert jnp.allclose(g2, g2_ref, atol=5e-3, rtol=5e-3), (g2, g2_ref)

    # --- multi-tile case: exercises batch padding + grid pipelining ---
    B2, D2, C2 = 300, 64, 10
    k4, k5, k6, k7 = jax.random.split(jax.random.PRNGKey(1), 4)
    x0b = jax.random.normal(k4, (B2, D2), dtype=jnp.float32)
    xb_ = jax.random.normal(k5, (B2, D2), dtype=jnp.float32)
    wb_ = jax.random.normal(k6, (D2, C2), dtype=jnp.float32) * 0.1
    bb_ = jax.random.normal(k7, (C2,), dtype=jnp.float32) * 0.01

    constraint_big = ConstraintMisclassifyPallas(x0b, wb_, bb_, softmax=True)
    g3 = jax.block_until_ready(constraint_big(xb_, tb=128))  # forces grid of 3
    g3_ref = _reference(xb_, wb_, bb_, constraint_big.y, use_softmax=True)
    assert g3.shape == (B2,)
    assert jnp.allclose(g3, g3_ref, atol=5e-3, rtol=5e-3), (g3, g3_ref)

    print("KERNEL_OK")
</pallas_src>

<mosaic_0001>
module attributes {stable_mosaic.version = 11 : i64} {
  func.func @_constraint_kernel(%arg0: i32, %arg1: memref<128x32xbf16, #tpu.memory_space<vmem>>, %arg2: memref<32x128xbf16, #tpu.memory_space<vmem>>, %arg3: memref<1x128xf32, #tpu.memory_space<vmem>>, %arg4: memref<1x128xi32, #tpu.memory_space<vmem>>, %arg5: memref<1x128xf32, #tpu.memory_space<vmem>>) attributes {dimension_semantics = [#tpu.dimension_semantics<parallel>], iteration_bounds = array<i64: 1>, scalar_prefetch = 0 : i64, scratch_operands = 0 : i64, tpu.core_type = #tpu.core_type<tc>, window_params = [{transform_indices = @transform_0, window_bounds = array<i64: 128, 32>}, {pipeline_mode = #tpu.pipeline_mode<synchronous>, transform_indices = @transform_1, window_bounds = array<i64: 32, 128>}, {pipeline_mode = #tpu.pipeline_mode<synchronous>, transform_indices = @transform_2, window_bounds = array<i64: 1, 128>}, {transform_indices = @transform_3, window_bounds = array<i64: 1, 128>}, {transform_indices = @transform_4, window_bounds = array<i64: 1, 128>}]} {
    %c0 = arith.constant 0 : index
    %c0_0 = arith.constant 0 : index
    %0 = vector.load %arg1[%c0, %c0_0] : memref<128x32xbf16, #tpu.memory_space<vmem>>, vector<128x32xbf16>
    %c0_1 = arith.constant 0 : index
    %c0_2 = arith.constant 0 : index
    %1 = vector.load %arg2[%c0_1, %c0_2] : memref<32x128xbf16, #tpu.memory_space<vmem>>, vector<32x128xbf16>
    %cst = arith.constant dense<0.000000e+00> : vector<128x128xf32>
    %2 = tpu.matmul %0, %1, %cst {dimension_numbers = #tpu.dot_dimension_numbers<[1], [0], [0], [1], [0, 0, 1, 1], [], []>} : vector<128x32xbf16>, vector<32x128xbf16>, vector<128x128xf32> -> vector<128x128xf32>
    %c0_3 = arith.constant 0 : index
    %c0_4 = arith.constant 0 : index
    %3 = vector.load %arg3[%c0_3, %c0_4] : memref<1x128xf32, #tpu.memory_space<vmem>>, vector<1x128xf32>
    %4 = vector.broadcast %3 : vector<1x128xf32> to vector<128x128xf32>
    %5 = arith.addf %2, %4 : vector<128x128xf32>
    %6 = tpu.transpose %5, [1, 0] : vector<128x128xf32> -> vector<128x128xf32>
    %c0_5 = arith.constant 0 : index
    %c0_6 = arith.constant 0 : index
    %7 = vector.load %arg4[%c0_5, %c0_6] : memref<1x128xi32, #tpu.memory_space<vmem>>, vector<1x128xi32>
    %8 = tpu.iota {dimensions = array<i32: 0>} : vector<128x128xi32>
    %9 = vector.broadcast %7 : vector<1x128xi32> to vector<128x128xi32>
    %10 = arith.cmpi eq, %8, %9 : vector<128x128xi32>
    %cst_7 = arith.constant 0.000000e+00 : f32
    %11 = vector.broadcast %cst_7 : f32 to vector<128x128xf32>
    %12 = arith.select %10, %6, %11 : vector<128x128xi1>, vector<128x128xf32>
    %cst_8 = arith.constant dense<0.000000e+00> : vector<128xf32>
    %13 = vector.multi_reduction <add>, %12, %cst_8 [0] : vector<128x128xf32> to vector<128xf32>
    %14 = vector.shape_cast %13 : vector<128xf32> to vector<1x128xf32>
    %cst_9 = arith.constant -1.000000e+30 : f32
    %15 = vector.broadcast %cst_9 : f32 to vector<128x128xf32>
    %16 = arith.select %10, %15, %6 : vector<128x128xi1>, vector<128x128xf32>
    %cst_10 = arith.constant dense<0xFF800000> : vector<128xf32>
    %17 = vector.multi_reduction <maximumf>, %16, %cst_10 [0] : vector<128x128xf32> to vector<128xf32>
    %18 = vector.shape_cast %17 : vector<128xf32> to vector<1x128xf32>
    %cst_11 = arith.constant dense<0xFF800000> : vector<128xf32>
    %19 = vector.multi_reduction <maximumf>, %6, %cst_11 [0] : vector<128x128xf32> to vector<128xf32>
    %20 = vector.shape_cast %19 : vector<128xf32> to vector<1x128xf32>
    %21 = vector.broadcast %20 : vector<1x128xf32> to vector<128x128xf32>
    %22 = arith.subf %6, %21 : vector<128x128xf32>
    %23 = math.exp %22 : vector<128x128xf32>
    %cst_12 = arith.constant dense<0.000000e+00> : vector<128xf32>
    %24 = vector.multi_reduction <add>, %23, %cst_12 [0] : vector<128x128xf32> to vector<128xf32>
    %25 = vector.shape_cast %24 : vector<128xf32> to vector<1x128xf32>
    %26 = tpu.reciprocal %25 {approx = true} : vector<1x128xf32> -> vector<1x128xf32>
    %27 = arith.subf %14, %20 : vector<1x128xf32>
    %28 = math.exp %27 : vector<1x128xf32>
    %29 = arith.subf %18, %20 : vector<1x128xf32>
    %30 = math.exp %29 : vector<1x128xf32>
    %31 = arith.subf %28, %30 : vector<1x128xf32>
    %32 = arith.mulf %31, %26 : vector<1x128xf32>
    %c0_13 = arith.constant 0 : index
    %c0_14 = arith.constant 0 : index
    %33 = vector.load %arg5[%c0_13, %c0_14] : memref<1x128xf32, #tpu.memory_space<vmem>>, vector<1x128xf32>
    tpu.vector_store %arg5[%c0_13, %c0_14], %32 {strides = array<i32>} : memref<1x128xf32, #tpu.memory_space<vmem>>, vector<1x128xf32>,
    return
  }
  func.func @transform_0(%arg0: i32) -> (i32, i32) {
    %c0_i32 = arith.constant 0 : i32
    %c0_i32_0 = arith.constant 0 : i32
    return %arg0, %c0_i32 : i32, i32
  }
  func.func @transform_1(%arg0: i32) -> (i32, i32) {
    %c0_i32 = arith.constant 0 : i32
    %c0_i32_0 = arith.constant 0 : i32
    %c0_i32_1 = arith.constant 0 : i32
    return %c0_i32, %c0_i32_0 : i32, i32
  }
  func.func @transform_2(%arg0: i32) -> (i32, i32) {
    %c0_i32 = arith.constant 0 : i32
    %c0_i32_0 = arith.constant 0 : i32
    %c0_i32_1 = arith.constant 0 : i32
    return %c0_i32, %c0_i32_0 : i32, i32
  }
  func.func @transform_3(%arg0: i32) -> (i32, i32) {
    %c0_i32 = arith.constant 0 : i32
    %c0_i32_0 = arith.constant 0 : i32
    return %c0_i32, %arg0 : i32, i32
  }
  func.func @transform_4(%arg0: i32) -> (i32, i32) {
    %c0_i32 = arith.constant 0 : i32
    %c0_i32_0 = arith.constant 0 : i32
    return %c0_i32, %arg0 : i32, i32
  }
}

</mosaic_0001>

<bundles_post_ra>
// kernel: constraint_misclassify_forward.1
= control target key start
LH: loop header
LB: loop body
LE: loop exit
PB: predicated region body
PF: predicated region fallthrough
CT: control target
= control target key end

     0   :  { %vm97_vm0 = vcmask 261120   ;;  %v252_v43 = vlaneseq  ;;  %s852_s1 = inlined_call_operand.vmem [shape: bf16[32,128], index: 1, kind: input, shape index: {}]   ;;  %s853_s0 = inlined_call_operand.vmem [shape: bf16[128,32], index: 0, kind: input, shape index: {}]   ;;  %s854_s2 = inlined_call_operand.vmem [shape: f32[1,128], index: 2, kind: input, shape index: {}]   ;;  %s855_s3 = inlined_call_operand.vmem [shape: s32[1,128], index: 3, kind: input, shape index: {}]   ;;  %s856_s4 = inlined_call_operand.vmem [shape: f32[1,128], index: 4, kind: output, shape index: {}]  }
   0x1   :  { %v521_v0 = vld [vmem:[%s852_s1] sm:$0xff]   ;;  %v522_v1 = vld [vmem:[%s852_s1 + $0x8] sm:$0xff]   ;;  %v525_v4 = vld [vmem:[%s853_s0 + $0x10] sm:$0xff]  }
   0x2   :  { %497 = vmatprep.subr.bf16.mxu0 %v521_v0  ;;  %v523_v2 = vld [vmem:[%s853_s0] sm:$0xff]   ;;  %517 = vmatprep.subr.bf16.mxu1 %v521_v0  ;;  %v524_v3 = vld [vmem:[%s853_s0 + $0x8] sm:$0xff]   ;;  %v529_v7 = vld [vmem:[%s853_s0 + $0x30] sm:$0xff]   ;;  %v637_v45 = vshrl.u32 %v252_v43, 7 }
   0x3   :  { %498 = vmatpush3.bf16.msra.mxu0 %v521_v0  ;;  %519 = vmatpush3.bf16.msra.mxu1 %v521_v0  ;;  %v527_v5 = vld [vmem:[%s853_s0 + $0x20] sm:$0xff]   ;;  %v528_v6 = vld [vmem:[%s853_s0 + $0x28] sm:$0xff]   ;;  %v526_v8 = vld [vmem:[%s853_s0 + $0x18] sm:$0xff]  }
   0x4   :  { %499 = vmatprep.subr.bf16.mxu0 %v522_v1  ;;  %501 = vmatprep.mubr.msk.bf16.mxu0 %vm97_vm0, %v523_v2  ;;  %v530_v9 = vld [vmem:[%s853_s0 + $0x38] sm:$0xff]   ;;  %v467_v10 = vld [vmem:[%s854_s2] ss:$0 sm:$0xff]  ;;  %v254_v47 = vadd.s32 8, %v637_v45  ;;  %v255_v48 = vadd.s32 16, %v637_v45  ;;  %v652_v51 = vadd.s32 24, %v637_v45 }
   0x5   :  { %518 = vmatprep.subr.bf16.mxu1 %v522_v1  ;;  %509 = vmatprep.mubr.msk.bf16.mxu1 %vm97_vm0, %v527_v5  ;;  %v646_v49 = vld [vmem:[%s855_s3] ss:$0 sm:$0xff]  ;;  %v257_v52 = vadd.s32 32, %v637_v45  ;;  %v258_v58 = vadd.s32 40, %v637_v45  ;;  %v259_v0 = vadd.s32 48, %v637_v45  ;;  %v260_v5 = vadd.s32 56, %v637_v45 }
   0x6   :  { %vm274_vm1 = vcmp.eq.s32.totalorder %v254_v47, %v646_v49  ;;  %vm273_vm2 = vcmp.eq.s32.totalorder %v637_v45, %v646_v49  ;;  %vm275_vm3 = vcmp.eq.s32.totalorder %v255_v48, %v646_v49  ;;  %vm276_vm4 = vcmp.eq.s32.totalorder %v652_v51, %v646_v49 }
   0x7   :  { %500 = vmatpush3.bf16.msra.mxu0 %v522_v1  ;;  %520 = vmatpush3.bf16.msra.mxu1 %v522_v1  ;;  %vm277_vm5 = vcmp.eq.s32.totalorder %v257_v52, %v646_v49  ;;  %vm278_vm6 = vcmp.eq.s32.totalorder %v258_v58, %v646_v49  ;;  %vm279_vm7 = vcmp.eq.s32.totalorder %v259_v0, %v646_v49  ;;  %v265_v47 = vadd.s32 96, %v637_v45 }
   0x8   :  { %vm280_vm8 = vcmp.eq.s32.totalorder %v260_v5, %v646_v49  ;;  %v266_v52 = vadd.s32 104, %v637_v45 }
   0x9   :  { %vm285_vm13 = vcmp.eq.s32.totalorder %v265_v47, %v646_v49 }
   0xa   :  { %502 = vmatmul.mubr.msk.bf16.vlgmr.msra.gmra.mrb[0].mxu0 %vm97_vm0, %v524_v3  ;;  %510 = vmatmul.mubr.msk.bf16.vlgmr.msra.gmra.mrb[0].mxu1 %vm97_vm0, %v528_v6  ;;  %vm286_vm14 = vcmp.eq.s32.totalorder %v266_v52, %v646_v49 }
   0xb   :  { %505 = vmatprep.mubr.msk.bf16.mxu0 %vm97_vm0, %v525_v4  ;;  %513 = vmatprep.mubr.msk.bf16.mxu1 %vm97_vm0, %v529_v7 }
  0x12   :  { %506 = vmatmul.mubr.msk.bf16.gmra.mrb[4].mxu0 %vm97_vm0, %v526_v8  ;;  %514 = vmatmul.mubr.msk.bf16.gmra.mrb[4].mxu1 %vm97_vm0, %v530_v9  ;;  %v261_v9 = vadd.s32 64, %v637_v45 }
  0x14   :  { %vm281_vm9 = vcmp.eq.s32.totalorder %v261_v9, %v646_v49 }
  0xdd   :  { %v503_v11 = vpop.f32.mrb[0].mxu0  ;;  %v511_v12 = vpop.f32.mrb[0].mxu1 }
  0xde   :  { %v156_v13 = vpop.f32.mrb[1].mxu0  ;;  %v188_v14 = vpop.f32.mrb[1].mxu1  ;;  %v165_v25 = vadd.f32 %v503_v11, %v467_v10  ;;  %v197_v37 = vadd.f32 %v511_v12, %v467_v10 }
  0xdf   :  { %v504_v15 = vpop.f32.mrb[2].mxu0  ;;  %v157_v16 = vadd.f32 %v467_v10, %v156_v13  ;;  %v512_v17 = vpop.f32.mrb[2].mxu1  ;;  %v189_v35 = vadd.f32 %v467_v10, %v188_v14  ;;  %v262_v14 = vadd.s32 72, %v637_v45 }
  0xe0   :  { %v159_v18 = vpop.f32.mrb[3].mxu0  ;;  %v191_v19 = vpop.f32.mrb[3].mxu1  ;;  %v168_v30 = vadd.f32 %v504_v15, %v467_v10  ;;  %v200_v38 = vadd.f32 %v512_v17, %v467_v10 }
  0xe1   :  { %219 = vxpose.xlu0.b32.start [1/16] %v157_v16, 128  ;;  %v160_v20 = vadd.f32 %v467_v10, %v159_v18  ;;  %v192_v36 = vadd.f32 %v467_v10, %v191_v19  ;;  %vm282_vm10 = vcmp.eq.s32.totalorder %v262_v14, %v646_v49 }
  0xe5   :  { %220 = vxpose.xlu0.b32.cont [2/16] %v160_v20, 128  ;;  %v507_v21 = vpop.f32.mrb[4].mxu0  ;;  %v515_v22 = vpop.f32.mrb[4].mxu1 }
  0xe6   :  { %v172_v23 = vpop.f32.mrb[5].mxu0  ;;  %v204_v24 = vpop.f32.mrb[5].mxu1  ;;  %v181_v33 = vadd.f32 %v507_v21, %v467_v10  ;;  %v213_v41 = vadd.f32 %v515_v22, %v467_v10 }
  0xe7   :  { %v508_v26 = vpop.f32.mrb[6].mxu0  ;;  %v516_v27 = vpop.f32.mrb[6].mxu1  ;;  %v173_v31 = vadd.f32 %v467_v10, %v172_v23  ;;  %v205_v39 = vadd.f32 %v467_v10, %v204_v24  ;;  %v263_v23 = vadd.s32 80, %v637_v45 }
  0xe8   :  { %v175_v28 = vpop.f32.mrb[7].mxu0  ;;  %v207_v29 = vpop.f32.mrb[7].mxu1  ;;  %v184_v34 = vadd.f32 %v508_v26, %v467_v10  ;;  %v216_v42 = vadd.f32 %v516_v27, %v467_v10 }
  0xe9   :  { %221 = vxpose.xlu0.b32.cont [3/16] %v165_v25, 128  ;;  %v176_v32 = vadd.f32 %v467_v10, %v175_v28  ;;  %v208_v40 = vadd.f32 %v467_v10, %v207_v29  ;;  %vm283_vm11 = vcmp.eq.s32.totalorder %v263_v23, %v646_v49 }
  0xed   :  { %222 = vxpose.xlu0.b32.cont [4/16] %v168_v30, 128 }
  0xf1   :  { %223 = vxpose.xlu0.b32.cont [5/16] %v173_v31, 128 }
  0xf5   :  { %224 = vxpose.xlu0.b32.cont [6/16] %v176_v32, 128  ;;  %v264_v32 = vadd.s32 88, %v637_v45 }
  0xf7   :  { %vm284_vm12 = vcmp.eq.s32.totalorder %v264_v32, %v646_v49 }
  0xf9   :  { %225 = vxpose.xlu0.b32.cont [7/16] %v181_v33, 128 }
  0xfd   :  { %226 = vxpose.xlu0.b32.cont [8/16] %v184_v34, 128 }
 0x101   :  { %227 = vxpose.xlu0.b32.cont [9/16] %v189_v35, 128 }
 0x105   :  { %228 = vxpose.xlu0.b32.cont [10/16] %v192_v36, 128 }
 0x109   :  { %229 = vxpose.xlu0.b32.cont [11/16] %v197_v37, 128 }
 0x10d   :  { %230 = vxpose.xlu0.b32.cont [12/16] %v200_v38, 128 }
 0x111   :  { %231 = vxpose.xlu0.b32.cont [13/16] %v205_v39, 128 }
 0x115   :  { %232 = vxpose.xlu0.b32.cont [14/16] %v208_v40, 128 }
 0x119   :  { %233 = vxpose.xlu0.b32.cont [15/16] %v213_v41, 128 }
 0x11d   :  { %234 = vxpose.xlu0.b32.end [16/16] %v216_v42, 128 }
 0x161   :  { %v635_v44 = vpop.trf.xlu0 }
 0x162   :  { %v289_v55 = vsel %vm273_vm2, %v635_v44, 0.0  ;;  %v326_v15 = vsel %vm273_vm2, -1e+30, %v635_v44 }
 0x165   :  { %v639_v46 = vpop.trf.xlu0 }
 0x166   :  { %v290_v53 = vsel %vm274_vm1, %v639_v46, 0.0  ;;  %v327_v24 = vsel %vm274_vm1, -1e+30, %v639_v46 }
 0x167   :  { %v305_v57 = vadd.f32 %v290_v53, %v289_v55 }
 0x169   :  { %v649_v50 = vpop.trf.xlu0 }
 0x16a   :  { %v291_v56 = vsel %vm275_vm3, %v649_v50, 0.0  ;;  %v328_v33 = vsel %vm275_vm3, -1e+30, %v649_v50 }
 0x16b   :  { %v306_v60 = vadd.f32 %v305_v57, %v291_v56  ;;  %v267_v56 = vadd.s32 112, %v637_v45 }
 0x16d   :  { %v661_v54 = vpop.trf.xlu0  ;;  %vm287_vm15 = vcmp.eq.s32.totalorder %v267_v56, %v646_v49 }
 0x16e   :  { %v292_v59 = vsel %vm276_vm4, %v661_v54, 0.0  ;;  %v329_v41 = vsel %vm276_vm4, -1e+30, %v661_v54 }
 0x16f   :  { %v307_v63 = vadd.f32 %v306_v60, %v292_v59 }
 0x171   :  { %v678_v61 = vpop.trf.xlu0 }
 0x172   :  { %v293_v62 = vsel %vm277_vm5, %v678_v61, 0.0  ;;  %v330_v11 = vsel %vm277_vm5, -1e+30, %v678_v61  ;;  %v363_v0 = vmax.f32 %v635_v44, %v678_v61 }
 0x173   :  { %v308_v1 = vadd.f32 %v307_v63, %v293_v62  ;;  %v342_v16 = vmax.f32 %v326_v15, %v330_v11  ;;  %v268_v62 = vadd.s32 120, %v637_v45 }
 0x175   :  { %v685_v2 = vpop.trf.xlu0  ;;  %vm288_vm0 = vcmp.eq.s32.totalorder %v268_v62, %v646_v49 }
 0x176   :  { %v294_v3 = vsel %vm278_vm6, %v685_v2, 0.0  ;;  %v331_v18 = vsel %vm278_vm6, -1e+30, %v685_v2  ;;  %v364_v63 = vmax.f32 %v639_v46, %v685_v2 }
 0x177   :  { %v309_v4 = vadd.f32 %v308_v1, %v294_v3  ;;  %v343_v25 = vmax.f32 %v327_v24, %v331_v18 }
 0x179   :  { %v692_v6 = vpop.trf.xlu0 }
 0x17a   :  { %v295_v7 = vsel %vm279_vm7, %v692_v6, 0.0  ;;  %v332_v27 = vsel %vm279_vm7, -1e+30, %v692_v6  ;;  %v365_v1 = vmax.f32 %v649_v50, %v692_v6 }
 0x17b   :  { %v310_v8 = vadd.f32 %v309_v4, %v295_v7  ;;  %v344_v34 = vmax.f32 %v328_v33, %v332_v27 }
 0x17d   :  { %v699_v10 = vpop.trf.xlu0 }
 0x17e   :  { %v296_v12 = vsel %vm280_vm8, %v699_v10, 0.0  ;;  %v333_v36 = vsel %vm280_vm8, -1e+30, %v699_v10  ;;  %v366_v45 = vmax.f32 %v661_v54, %v699_v10 }
 0x17f   :  { %v311_v13 = vadd.f32 %v310_v8, %v296_v12  ;;  %v345_v42 = vmax.f32 %v329_v41, %v333_v36 }
 0x181   :  { %v713_v17 = vpop.trf.xlu0 }
 0x182   :  { %v297_v19 = vsel %vm281_vm9, %v713_v17, 0.0  ;;  %v334_v20 = vsel %vm281_vm9, -1e+30, %v713_v17  ;;  %v367_v8 = vmax.f32 %v363_v0, %v713_v17 }
 0x183   :  { %v312_v21 = vadd.f32 %v311_v13, %v297_v19  ;;  %v346_v22 = vmax.f32 %v342_v16, %v334_v20 }
 0x185   :  { %v725_v26 = vpop.trf.xlu0 }
 0x186   :  { %v298_v28 = vsel %vm282_vm10, %v725_v26, 0.0  ;;  %v335_v29 = vsel %vm282_vm10, -1e+30, %v725_v26  ;;  %v368_v7 = vmax.f32 %v364_v63, %v725_v26 }
 0x187   :  { %v313_v30 = vadd.f32 %v312_v21, %v298_v28  ;;  %v347_v31 = vmax.f32 %v343_v25, %v335_v29 }
 0x189   :  { %v737_v35 = vpop.trf.xlu0 }
 0x18a   :  { %v299_v37 = vsel %vm283_vm11, %v737_v35, 0.0  ;;  %v336_v38 = vsel %vm283_vm11, -1e+30, %v737_v35  ;;  %v369_v9 = vmax.f32 %v365_v1, %v737_v35 }
 0x18b   :  { %v314_v39 = vadd.f32 %v313_v30, %v299_v37  ;;  %v348_v40 = vmax.f32 %v344_v34, %v336_v38 }
 0x18d   :  { %v749_v43 = vpop.trf.xlu0 }
 0x18e   :  { %v337_v48 = vsel %vm284_vm12, -1e+30, %v749_v43  ;;  %v300_v3 = vsel %vm284_vm12, %v749_v43, 0.0  ;;  %v370_v15 = vmax.f32 %v366_v45, %v749_v43 }
 0x18f   :  { %v349_v53 = vmax.f32 %v345_v42, %v337_v48  ;;  %v315_v12 = vadd.f32 %v314_v39, %v300_v3 }
 0x191   :  { %v756_v55 = vpop.trf.xlu0 }
 0x192   :  { %v338_v51 = vsel %vm285_vm13, -1e+30, %v756_v55  ;;  %v301_v11 = vsel %vm285_vm13, %v756_v55, 0.0  ;;  %v371_v16 = vmax.f32 %v367_v8, %v756_v55 }
 0x193   :  { %v350_v59 = vmax.f32 %v346_v22, %v338_v51  ;;  %v316_v20 = vadd.f32 %v315_v12, %v301_v11 }
 0x195   :  { %v764_v57 = vpop.trf.xlu0 }
 0x196   :  { %v339_v58 = vsel %vm286_vm14, -1e+30, %v764_v57  ;;  %v372_v13 = vmax.f32 %v368_v7, %v764_v57  ;;  %v302_v18 = vsel %vm286_vm14, %v764_v57, 0.0 }
 0x197   :  { %v351_v60 = vmax.f32 %v347_v31, %v339_v58  ;;  %v317_v28 = vadd.f32 %v316_v20, %v302_v18 }
 0x198   :  { %v375_v29 = vmax.f32 %v371_v16, %v372_v13 }
 0x199   :  { %v354_v4 = vmax.f32 %v350_v59, %v351_v60  ;;  %v780_v5 = vpop.trf.xlu0 }
 0x19a   :  { %v340_v14 = vsel %vm287_vm15, -1e+30, %v780_v5  ;;  %v373_v21 = vmax.f32 %v369_v9, %v780_v5  ;;  %v303_v24 = vsel %vm287_vm15, %v780_v5, 0.0 }
 0x19b   :  { %v352_v25 = vmax.f32 %v348_v40, %v340_v14  ;;  %v318_v33 = vadd.f32 %v317_v28, %v303_v24 }
 0x19d   :  { %v800_v19 = vpop.trf.xlu0 }
 0x19e   :  { %v341_v22 = vsel %vm288_vm0, -1e+30, %v800_v19  ;;  %v374_v23 = vmax.f32 %v370_v15, %v800_v19  ;;  %v304_v31 = vsel %vm288_vm0, %v800_v19, 0.0 }
 0x19f   :  { %v353_v27 = vmax.f32 %v349_v53, %v341_v22  ;;  %v319_v37 = vadd.f32 %v318_v33, %v304_v31 }
 0x1a0   :  { %v376_v30 = vmax.f32 %v373_v21, %v374_v23 }
 0x1a1   :  { %v355_v32 = vmax.f32 %v352_v25, %v353_v27  ;;  %v320_v42 = vrot.slane %v319_v37, 4 }
 0x1a2   :  { %v377_v34 = vmax.f32 %v375_v29, %v376_v30 }
 0x1a3   :  { %v356_v36 = vmax.f32 %v354_v4, %v355_v32  ;;  %v321_v52 = vadd.f32 %v320_v42, %v319_v37 }
 0x1a4   :  { %v378_v38 = vrot.slane %v377_v34, 4 }
 0x1a5   :  { %v357_v41 = vrot.slane %v356_v36, 4  ;;  %v322_v58 = vrot.slane %v321_v52, 2 }
 0x1a6   :  { %v379_v39 = vmax.f32 %v377_v34, %v378_v38 }
 0x1a7   :  { %v358_v40 = vmax.f32 %v356_v36, %v357_v41  ;;  %v323_v0 = vadd.f32 %v322_v58, %v321_v52 }
 0x1a8   :  { %v380_v47 = vrot.slane %v379_v39, 2 }
 0x1a9   :  { %v359_v56 = vrot.slane %v358_v40, 2  ;;  %v324_v8 = vrot.slane %v323_v0, 1 }
 0x1aa   :  { %v381_v48 = vmax.f32 %v379_v39, %v380_v47 }
 0x1ab   :  { %v360_v62 = vmax.f32 %v358_v40, %v359_v56  ;;  %v325_v12 = vadd.f32 %v324_v8, %v323_v0 }
 0x1ac   :  { %v382_v53 = vrot.slane %v381_v48, 1 }
 0x1ad   :  { %v361_v7 = vrot.slane %v360_v62, 1 }
 0x1ae   :  { %v813_v51 = vmax.f32 %v381_v48, %v382_v53 }
 0x1af   :  { %v362_v9 = vmax.f32 %v360_v62, %v361_v7 }
 0x1b0   :  { %v384_v49 = vsub.f32 %v635_v44, %v813_v51  ;;  %v385_v59 = vsub.f32 %v639_v46, %v813_v51  ;;  %v386_v60 = vsub.f32 %v649_v50, %v813_v51  ;;  %v387_v63 = vsub.f32 %v661_v54, %v813_v51 }
 0x1b1   :  { %v388_v4 = vsub.f32 %v678_v61, %v813_v51  ;;  %v389_v44 = vsub.f32 %v685_v2, %v813_v51  ;;  %v390_v50 = vsub.f32 %v692_v6, %v813_v51  ;;  %v391_v11 = vsub.f32 %v699_v10, %v813_v51 }
 0x1b2   :  { %v400_v1 = vmul.f32 1.442695, %v384_v49  ;;  %v402_v3 = vmul.f32 1.442695, %v385_v59  ;;  %v404_v45 = vmul.f32 1.442695, %v386_v60  ;;  %v392_v13 = vsub.f32 %v713_v17, %v813_v51 }
 0x1b3   :  { %v406_v46 = vmul.f32 1.442695, %v387_v63  ;;  %v408_v54 = vmul.f32 1.442695, %v388_v4  ;;  %v410_v61 = vmul.f32 1.442695, %v389_v44  ;;  %v393_v2 = vsub.f32 %v725_v26, %v813_v51 }
 0x1b4   :  { %531 = vpow2.f32 %v400_v1  ;;  %v412_v14 = vmul.f32 1.442695, %v390_v50  ;;  %v454_v15 = vsub.f32 %v325_v12, %v813_v51  ;;  %v414_v6 = vmul.f32 1.442695, %v391_v11 }
 0x1b5   :  { %533 = vpow2.f32 %v402_v3  ;;  %v457_v16 = vsub.f32 %v362_v9, %v813_v51  ;;  %v416_v20 = vmul.f32 1.442695, %v392_v13  ;;  %v394_v21 = vsub.f32 %v737_v35, %v813_v51 }
 0x1b6   :  { %535 = vpow2.f32 %v404_v45  ;;  %v418_v22 = vmul.f32 1.442695, %v393_v2  ;;  %v455_v23 = vmul.f32 1.442695, %v454_v15  ;;  %v395_v26 = vsub.f32 %v749_v43, %v813_v51 }
 0x1b7   :  { %537 = vpow2.f32 %v406_v46  ;;  %v458_v25 = vmul.f32 1.442695, %v457_v16  ;;  %v396_v29 = vsub.f32 %v756_v55, %v813_v51  ;;  %v420_v30 = vmul.f32 1.442695, %v394_v21 }
 0x1b8   :  { %539 = vpow2.f32 %v408_v54  ;;  %v397_v32 = vsub.f32 %v764_v57, %v813_v51  ;;  %v422_v33 = vmul.f32 1.442695, %v395_v26  ;;  %v398_v36 = vsub.f32 %v780_v5, %v813_v51 }
 0x1b9   :  { %541 = vpow2.f32 %v410_v61  ;;  %v424_v37 = vmul.f32 1.442695, %v396_v29  ;;  %v399_v55 = vsub.f32 %v800_v19, %v813_v51 }
 0x1ba   :  { %543 = vpow2.f32 %v412_v14  ;;  %v426_v41 = vmul.f32 1.442695, %v397_v32  ;;  %v428_v57 = vmul.f32 1.442695, %v398_v36 }
 0x1bb   :  { %545 = vpow2.f32 %v414_v6  ;;  %v430_v53 = vmul.f32 1.442695, %v399_v55 }
 0x1bc   :  { %547 = vpow2.f32 %v416_v20 }
 0x1bd   :  { %549 = vpow2.f32 %v418_v22 }
 0x1be   :  { %v532_v18 = vpop.eup %531  ;;  %551 = vpow2.f32 %v455_v23 }
 0x1bf   :  { %v534_v10 = vpop.eup %533  ;;  %553 = vpow2.f32 %v458_v25 }
 0x1c0   :  { %v432_v17 = vadd.f32 %v534_v10, %v532_v18  ;;  %v536_v24 = vpop.eup %535  ;;  %555 = vpow2.f32 %v420_v30 }
 0x1c1   :  { %v538_v28 = vpop.eup %537  ;;  %557 = vpow2.f32 %v422_v33 }
 0x1c2   :  { %v433_v27 = vadd.f32 %v536_v24, %v432_v17  ;;  %v540_v35 = vpop.eup %539  ;;  %559 = vpow2.f32 %v424_v37 }
 0x1c3   :  { %v542_v43 = vpop.eup %541  ;;  %561 = vpow2.f32 %v426_v41 }
 0x1c4   :  { %v434_v31 = vadd.f32 %v538_v28, %v433_v27  ;;  %v544_v39 = vpop.eup %543  ;;  %563 = vpow2.f32 %v428_v57 }
 0x1c5   :  { %v546_v47 = vpop.eup %545  ;;  %565 = vpow2.f32 %v430_v53 }
 0x1c6   :  { %v435_v34 = vadd.f32 %v540_v35, %v434_v31  ;;  %v548_v48 = vpop.eup %547 }
 0x1c7   :  { %v550_v52 = vpop.eup %549 }
 0x1c8   :  { %v436_v38 = vadd.f32 %v542_v43, %v435_v34  ;;  %v552_v56 = vpop.eup %551 }
 0x1c9   :  { %v554_v58 = vpop.eup %553 }
 0x1ca   :  { %v437_v42 = vadd.f32 %v544_v39, %v436_v38  ;;  %v460_v59 = vsub.f32 %v552_v56, %v554_v58  ;;  %v556_v60 = vpop.eup %555 }
 0x1cb   :  { %v558_v51 = vpop.eup %557 }
 0x1cc   :  { %v438_v40 = vadd.f32 %v546_v47, %v437_v42  ;;  %v560_v63 = vpop.eup %559 }
 0x1cd   :  { %v562_v1 = vpop.eup %561 }
 0x1ce   :  { %v439_v5 = vadd.f32 %v548_v48, %v438_v40  ;;  %v564_v4 = vpop.eup %563 }
 0x1cf   :  { %v566_v7 = vpop.eup %565 }
 0x1d0   :  { %v440_v49 = vadd.f32 %v550_v52, %v439_v5 }
 0x1d2   :  { %v441_v19 = vadd.f32 %v556_v60, %v440_v49 }
 0x1d4   :  { %v442_v62 = vadd.f32 %v558_v51, %v441_v19 }
 0x1d6   :  { %v443_v0 = vadd.f32 %v560_v63, %v442_v62 }
 0x1d8   :  { %v444_v3 = vadd.f32 %v562_v1, %v443_v0 }
 0x1da   :  { %v445_v45 = vadd.f32 %v564_v4, %v444_v3 }
 0x1dc   :  { %v446_v44 = vadd.f32 %v566_v7, %v445_v45 }
 0x1de   :  { %v447_v46 = vrot.slane %v446_v44, 4 }
 0x1e0   :  { %v448_v8 = vadd.f32 %v447_v46, %v446_v44 }
 0x1e2   :  { %v449_v50 = vrot.slane %v448_v8, 2 }
 0x1e4   :  { %v450_v54 = vadd.f32 %v449_v50, %v448_v8 }
 0x1e6   :  { %v451_v9 = vrot.slane %v450_v54, 1 }
 0x1e8   :  { %v452_v11 = vadd.f32 %v451_v9, %v450_v54 }
 0x1ea   :  { %567 = vrcp.f32 %v452_v11 }
 0x1f4   :  { %v568_v61 = vpop.eup %567 }
 0x1f5   :  { %v461_v12 = vmul.f32 %v568_v61, %v460_v59 }
 0x1f7   :  { %462 = vst [vmem:[%s856_s4] sm:$0x1] %v461_v12 }

</bundles_post_ra>
